<compile_context>
chip_gen: v7x
topology: tpu7x:2x2x1
jax: 0.10.0
libtpu: 0.0.40
codegen_flags: <defaults>
</compile_context>

<pallas_src>
import math

import jax
import jax.numpy as jnp
import numpy as np
from jax.experimental import pallas as pl
from jax.experimental.pallas import tpu as pltpu

_LN_EPS = 1e-5


def simlpe_kernel(x_ref, win_t_ref, bin_ref, wfc_ref, bfc_ref,
                  alpha_ref, beta_ref, wout_t_ref, bout_ref, out_ref):
    """One batch element per grid step.  Activation layout is (N, D): temporal index on
    sublanes, motion dim D on lanes (lane-dense loads/stores, no transposes)."""
    x = x_ref[0]                                               # (N, D)
    num_blocks = wfc_ref.shape[0]

    # motion_fc_in (Linear over D; temporal_fc_in = False), fused bias add.
    y = jnp.dot(x, win_t_ref[...], preferred_element_type=jnp.float32) + bin_ref[...]

    # motion_mlp: L x (Temporal_FC -> spatial LayerNorm -> residual).
    # arr0/arr1 are absorbed: the Temporal_FC over the 'b d n' layout's last axis is exactly
    # a left-multiply by W_fc in this (N, D) layout.
    def block(l, y):
        w_fc = wfc_ref[l]                                      # (N, N), used UN-transposed
        z = jnp.dot(w_fc, y, preferred_element_type=jnp.float32) + bfc_ref[l]   # (N, D)
        # Spatial LayerNorm: normalize over the motion dim D (lane axis), per-D affine.
        mean = jnp.mean(z, axis=-1, keepdims=True)
        var = jnp.mean((z - mean) ** 2, axis=-1, keepdims=True)
        zn = (z - mean) * jax.lax.rsqrt(var + _LN_EPS)         # rsqrt -> EUP slot
        zn = zn * alpha_ref[l] + beta_ref[l]                   # (1, D) affine
        return y + zn                                          # residual

    # L is small here -> fully unroll for LLO scheduling visibility; at production depth
    # (~48 blocks) switch to unroll=2..4 to bound live ranges.
    y = jax.lax.fori_loop(0, num_blocks, block, y, unroll=True)

    # motion_fc_out (Linear over D; temporal_fc_out = False).
    out_ref[0] = (jnp.dot(y, wout_t_ref[...], preferred_element_type=jnp.float32)
                  + bout_ref[...])


def simlpe_forward(x, params):
    """x: (B, N, D) float32.  params: dict of weights in PyTorch layout (see init_params)."""
    B, N, D = x.shape
    L = params["w_fc"].shape[0]

    # Wrapper-side layout plumbing (free; keeps all transposes/reshapes out of the kernel).
    win_t = params["w_in"].T                       # (D, D): kernel does x @ W_in^T
    wout_t = params["w_out"].T                     # (D, D)
    b_in = params["b_in"].reshape(1, D)
    b_out = params["b_out"].reshape(1, D)
    w_fc = params["w_fc"]                          # (L, N, N): LEFT operand, no transpose
    b_fc = params["b_fc"].reshape(L, N, 1)         # per-temporal-row bias (column vector)
    alpha = params["alpha"].reshape(L, 1, D)       # per-D LN scale
    beta = params["beta"].reshape(L, 1, D)         # per-D LN shift

    def full_spec(shape):
        # Full-extent block, resident in VMEM across the whole grid (weights are tiny).
        return pl.BlockSpec(shape, lambda b: (0,) * len(shape))

    grid_spec = pltpu.PrefetchScalarGridSpec(
        num_scalar_prefetch=0,
        grid=(B,),                                 # batch-parallel (megacore on v7x)
        in_specs=[
            pl.BlockSpec((1, N, D), lambda b: (b, 0, 0)),   # x: one batch slab per step
            full_spec((D, D)),                               # W_in^T
            full_spec((1, D)),                               # b_in
            full_spec((L, N, N)),                            # W_fc stack
            full_spec((L, N, 1)),                            # b_fc stack
            full_spec((L, 1, D)),                            # LN alpha
            full_spec((L, 1, D)),                            # LN beta
            full_spec((D, D)),                               # W_out^T
            full_spec((1, D)),                               # b_out
        ],
        out_specs=pl.BlockSpec((1, N, D), lambda b: (b, 0, 0)),
    )
    return pl.pallas_call(
        simlpe_kernel,
        out_shape=jax.ShapeDtypeStruct((B, N, D), jnp.float32),
        grid_spec=grid_spec,
        compiler_params=pltpu.CompilerParams(
            dimension_semantics=("parallel",)),
    )(x, win_t, b_in, w_fc, b_fc, alpha, beta, wout_t, b_out)


def simlpe_reference(x, params):
    """Pure-JAX mirror of the PyTorch forward (temporal_fc_in/out = False) for validation."""
    hi = jax.lax.Precision.HIGHEST
    y = jnp.einsum("bnd,ed->bne", x, params["w_in"], precision=hi) + params["b_in"]
    f = jnp.swapaxes(y, 1, 2)                      # arr0: (B, D, N)
    L = params["w_fc"].shape[0]
    for l in range(L):
        f_ = jnp.einsum("bdn,mn->bdm", f, params["w_fc"][l], precision=hi) + params["b_fc"][l]
        mean = f_.mean(axis=1, keepdims=True)      # spatial LN over D
        var = ((f_ - mean) ** 2).mean(axis=1, keepdims=True)
        f_ = (f_ - mean) / jnp.sqrt(var + _LN_EPS)
        f_ = f_ * params["alpha"][l][None, :, None] + params["beta"][l][None, :, None]
        f = f + f_
    y = jnp.swapaxes(f, 1, 2)                      # arr1: (B, N, D)
    return jnp.einsum("bnd,ed->bne", y, params["w_out"], precision=hi) + params["b_out"]


def init_params(key, N, D, L, gain=1.0):
    """Parameters in PyTorch layout (nn.Linear weight = (out, in)).
    NOTE: the module's reset_parameters uses xavier_uniform_(gain=1e-8) and zero biases for
    motion_fc_in/out (and the reference build_mlps does likewise for the block FCs, with LN
    alpha=1, beta=0).  The smoke test uses gain=1.0 and small non-zero biases / affine
    perturbations so the numerics are non-degenerate; forward semantics are unchanged."""
    ks = jax.random.split(key, 8)

    def xavier(k, shape, fan_in, fan_out):
        bound = gain * math.sqrt(6.0 / (fan_in + fan_out))
        return jax.random.uniform(k, shape, jnp.float32, -bound, bound)

    def small(k, shape, scale=0.1):
        return scale * jax.random.uniform(k, shape, jnp.float32, -1.0, 1.0)

    return dict(
        w_in=xavier(ks[0], (D, D), D, D),          # motion_fc_in.weight
        b_in=small(ks[1], (D,)),                   # motion_fc_in.bias
        w_fc=xavier(ks[2], (L, N, N), N, N),       # L x Temporal_FC (nn.Linear(N, N)).weight
        b_fc=small(ks[3], (L, N)),                 # L x Temporal_FC bias
        alpha=1.0 + small(ks[4], (L, D)),          # L x spatial-LN scale (per motion dim)
        beta=small(ks[5], (L, D)),                 # L x spatial-LN shift
        w_out=xavier(ks[6], (D, D), D, D),         # motion_fc_out.weight
        b_out=small(ks[7], (D,)),                  # motion_fc_out.bias
    )


if __name__ == "__main__":
    # Small shapes consistent with the module:
    #   B = batch, N = h36m_input_length_dct (temporal/DCT length), D = motion dim,
    #   L = number of MLP blocks.  (Production: N~50, D~54-66, L~48 — the lane width is
    #   fixed by the model's motion dim, so the kernel must handle D < 128 masked stores.)
    B, N, D, L = 2, 16, 64, 4

    key = jax.random.PRNGKey(0)
    kx, kp = jax.random.split(key)
    x = jax.random.normal(kx, (B, N, D), jnp.float32)
    params = init_params(kp, N, D, L)

    out = jax.block_until_ready(simlpe_forward(x, params))
    assert out.shape == (B, N, D) and out.dtype == jnp.float32
    assert bool(jnp.all(jnp.isfinite(out)))

    ref = jax.block_until_ready(simlpe_reference(x, params))
    # Loose tolerance: covers any matmul-precision difference between the in-kernel MXU path
    # and the XLA reference; genuine layout/orientation bugs would be O(1) off.
    np.testing.assert_allclose(np.asarray(out), np.asarray(ref), rtol=5e-2, atol=5e-2)

    print("KERNEL_OK")
</pallas_src>

<mosaic_0001>
module attributes {stable_mosaic.version = 11 : i64} {
  func.func @simlpe_kernel(%arg0: i32, %arg1: memref<1x16x64xf32, #tpu.memory_space<vmem>>, %arg2: memref<64x64xf32, #tpu.memory_space<vmem>>, %arg3: memref<1x64xf32, #tpu.memory_space<vmem>>, %arg4: memref<4x16x16xf32, #tpu.memory_space<vmem>>, %arg5: memref<4x16x1xf32, #tpu.memory_space<vmem>>, %arg6: memref<4x1x64xf32, #tpu.memory_space<vmem>>, %arg7: memref<4x1x64xf32, #tpu.memory_space<vmem>>, %arg8: memref<64x64xf32, #tpu.memory_space<vmem>>, %arg9: memref<1x64xf32, #tpu.memory_space<vmem>>, %arg10: memref<1x16x64xf32, #tpu.memory_space<vmem>>) attributes {dimension_semantics = [#tpu.dimension_semantics<parallel>], iteration_bounds = array<i64: 2>, scalar_prefetch = 0 : i64, scratch_operands = 0 : i64, tpu.core_type = #tpu.core_type<tc>, window_params = [{transform_indices = @transform_0, window_bounds = array<i64: 1, 16, 64>}, {pipeline_mode = #tpu.pipeline_mode<synchronous>, transform_indices = @transform_1, window_bounds = array<i64: 64, 64>}, {pipeline_mode = #tpu.pipeline_mode<synchronous>, transform_indices = @transform_2, window_bounds = array<i64: 1, 64>}, {pipeline_mode = #tpu.pipeline_mode<synchronous>, transform_indices = @transform_3, window_bounds = array<i64: 4, 16, 16>}, {pipeline_mode = #tpu.pipeline_mode<synchronous>, transform_indices = @transform_4, window_bounds = array<i64: 4, 16, 1>}, {pipeline_mode = #tpu.pipeline_mode<synchronous>, transform_indices = @transform_5, window_bounds = array<i64: 4, 1, 64>}, {pipeline_mode = #tpu.pipeline_mode<synchronous>, transform_indices = @transform_6, window_bounds = array<i64: 4, 1, 64>}, {pipeline_mode = #tpu.pipeline_mode<synchronous>, transform_indices = @transform_7, window_bounds = array<i64: 64, 64>}, {pipeline_mode = #tpu.pipeline_mode<synchronous>, transform_indices = @transform_8, window_bounds = array<i64: 1, 64>}, {transform_indices = @transform_9, window_bounds = array<i64: 1, 16, 64>}]} {
    %c0 = arith.constant 0 : index
    %c0_0 = arith.constant 0 : index
    %c0_1 = arith.constant 0 : index
    %0 = vector.load %arg1[%c0, %c0_0, %c0_1] : memref<1x16x64xf32, #tpu.memory_space<vmem>>, vector<1x16x64xf32>
    %1 = vector.shape_cast %0 : vector<1x16x64xf32> to vector<16x64xf32>
    %c0_2 = arith.constant 0 : index
    %c0_3 = arith.constant 0 : index
    %2 = vector.load %arg2[%c0_2, %c0_3] : memref<64x64xf32, #tpu.memory_space<vmem>>, vector<64x64xf32>
    %cst = arith.constant dense<0.000000e+00> : vector<16x64xf32>
    %3 = tpu.matmul %1, %2, %cst {dimension_numbers = #tpu.dot_dimension_numbers<[1], [0], [0], [1], [0, 0, 1, 1], [], []>} : vector<16x64xf32>, vector<64x64xf32>, vector<16x64xf32> -> vector<16x64xf32>
    %c0_4 = arith.constant 0 : index
    %c0_5 = arith.constant 0 : index
    %4 = vector.load %arg3[%c0_4, %c0_5] : memref<1x64xf32, #tpu.memory_space<vmem>>, vector<1x64xf32>
    %5 = vector.broadcast %4 : vector<1x64xf32> to vector<16x64xf32>
    %6 = arith.addf %3, %5 : vector<16x64xf32>
    %c0_i32 = arith.constant 0 : i32
    %7 = arith.index_cast %c0_i32 : i32 to index
    %c0_6 = arith.constant 0 : index
    %c0_7 = arith.constant 0 : index
    %8 = vector.load %arg4[%7, %c0_6, %c0_7] : memref<4x16x16xf32, #tpu.memory_space<vmem>>, vector<1x16x16xf32>
    %9 = vector.shape_cast %8 : vector<1x16x16xf32> to vector<16x16xf32>
    %cst_8 = arith.constant dense<0.000000e+00> : vector<16x64xf32>
    %10 = tpu.matmul %9, %6, %cst_8 {dimension_numbers = #tpu.dot_dimension_numbers<[1], [0], [0], [1], [0, 0, 1, 1], [], []>} : vector<16x16xf32>, vector<16x64xf32>, vector<16x64xf32> -> vector<16x64xf32>
    %11 = arith.index_cast %c0_i32 : i32 to index
    %c0_9 = arith.constant 0 : index
    %c0_10 = arith.constant 0 : index
    %12 = vector.load %arg5[%11, %c0_9, %c0_10] : memref<4x16x1xf32, #tpu.memory_space<vmem>>, vector<1x16x1xf32>
    %13 = vector.shape_cast %12 : vector<1x16x1xf32> to vector<16x1xf32>
    %14 = vector.broadcast %13 : vector<16x1xf32> to vector<16x64xf32>
    %15 = arith.addf %10, %14 : vector<16x64xf32>
    %cst_11 = arith.constant dense<0.000000e+00> : vector<16xf32>
    %16 = vector.multi_reduction <add>, %15, %cst_11 [1] : vector<16x64xf32> to vector<16xf32>
    %17 = vector.shape_cast %16 : vector<16xf32> to vector<16x1xf32>
    %cst_12 = arith.constant 6.400000e+01 : f32
    %18 = vector.broadcast %cst_12 : f32 to vector<16x1xf32>
    %19 = arith.divf %17, %18 : vector<16x1xf32>
    %20 = vector.broadcast %19 : vector<16x1xf32> to vector<16x64xf32>
    %21 = arith.subf %15, %20 : vector<16x64xf32>
    %22 = arith.mulf %21, %21 : vector<16x64xf32>
    %cst_13 = arith.constant dense<0.000000e+00> : vector<16xf32>
    %23 = vector.multi_reduction <add>, %22, %cst_13 [1] : vector<16x64xf32> to vector<16xf32>
    %24 = vector.shape_cast %23 : vector<16xf32> to vector<16x1xf32>
    %cst_14 = arith.constant 6.400000e+01 : f32
    %25 = vector.broadcast %cst_14 : f32 to vector<16x1xf32>
    %26 = arith.divf %24, %25 : vector<16x1xf32>
    %27 = vector.broadcast %19 : vector<16x1xf32> to vector<16x64xf32>
    %28 = arith.subf %15, %27 : vector<16x64xf32>
    %cst_15 = arith.constant 9.99999974E-6 : f32
    %29 = vector.broadcast %cst_15 : f32 to vector<16x1xf32>
    %30 = arith.addf %26, %29 : vector<16x1xf32>
    %31 = math.rsqrt %30 : vector<16x1xf32>
    %32 = vector.broadcast %31 : vector<16x1xf32> to vector<16x64xf32>
    %33 = arith.mulf %28, %32 : vector<16x64xf32>
    %34 = arith.index_cast %c0_i32 : i32 to index
    %c0_16 = arith.constant 0 : index
    %c0_17 = arith.constant 0 : index
    %35 = vector.load %arg6[%34, %c0_16, %c0_17] : memref<4x1x64xf32, #tpu.memory_space<vmem>>, vector<1x1x64xf32>
    %36 = vector.shape_cast %35 : vector<1x1x64xf32> to vector<1x64xf32>
    %37 = vector.broadcast %36 : vector<1x64xf32> to vector<16x64xf32>
    %38 = arith.mulf %33, %37 : vector<16x64xf32>
    %39 = arith.index_cast %c0_i32 : i32 to index
    %c0_18 = arith.constant 0 : index
    %c0_19 = arith.constant 0 : index
    %40 = vector.load %arg7[%39, %c0_18, %c0_19] : memref<4x1x64xf32, #tpu.memory_space<vmem>>, vector<1x1x64xf32>
    %41 = vector.shape_cast %40 : vector<1x1x64xf32> to vector<1x64xf32>
    %42 = vector.broadcast %41 : vector<1x64xf32> to vector<16x64xf32>
    %43 = arith.addf %38, %42 : vector<16x64xf32>
    %44 = arith.addf %6, %43 : vector<16x64xf32>
    %c1_i32 = arith.constant 1 : i32
    %45 = arith.index_cast %c1_i32 : i32 to index
    %c0_20 = arith.constant 0 : index
    %c0_21 = arith.constant 0 : index
    %46 = vector.load %arg4[%45, %c0_20, %c0_21] : memref<4x16x16xf32, #tpu.memory_space<vmem>>, vector<1x16x16xf32>
    %47 = vector.shape_cast %46 : vector<1x16x16xf32> to vector<16x16xf32>
    %cst_22 = arith.constant dense<0.000000e+00> : vector<16x64xf32>
    %48 = tpu.matmul %47, %44, %cst_22 {dimension_numbers = #tpu.dot_dimension_numbers<[1], [0], [0], [1], [0, 0, 1, 1], [], []>} : vector<16x16xf32>, vector<16x64xf32>, vector<16x64xf32> -> vector<16x64xf32>
    %49 = arith.index_cast %c1_i32 : i32 to index
    %c0_23 = arith.constant 0 : index
    %c0_24 = arith.constant 0 : index
    %50 = vector.load %arg5[%49, %c0_23, %c0_24] : memref<4x16x1xf32, #tpu.memory_space<vmem>>, vector<1x16x1xf32>
    %51 = vector.shape_cast %50 : vector<1x16x1xf32> to vector<16x1xf32>
    %52 = vector.broadcast %51 : vector<16x1xf32> to vector<16x64xf32>
    %53 = arith.addf %48, %52 : vector<16x64xf32>
    %cst_25 = arith.constant dense<0.000000e+00> : vector<16xf32>
    %54 = vector.multi_reduction <add>, %53, %cst_25 [1] : vector<16x64xf32> to vector<16xf32>
    %55 = vector.shape_cast %54 : vector<16xf32> to vector<16x1xf32>
    %cst_26 = arith.constant 6.400000e+01 : f32
    %56 = vector.broadcast %cst_26 : f32 to vector<16x1xf32>
    %57 = arith.divf %55, %56 : vector<16x1xf32>
    %58 = vector.broadcast %57 : vector<16x1xf32> to vector<16x64xf32>
    %59 = arith.subf %53, %58 : vector<16x64xf32>
    %60 = arith.mulf %59, %59 : vector<16x64xf32>
    %cst_27 = arith.constant dense<0.000000e+00> : vector<16xf32>
    %61 = vector.multi_reduction <add>, %60, %cst_27 [1] : vector<16x64xf32> to vector<16xf32>
    %62 = vector.shape_cast %61 : vector<16xf32> to vector<16x1xf32>
    %cst_28 = arith.constant 6.400000e+01 : f32
    %63 = vector.broadcast %cst_28 : f32 to vector<16x1xf32>
    %64 = arith.divf %62, %63 : vector<16x1xf32>
    %65 = vector.broadcast %57 : vector<16x1xf32> to vector<16x64xf32>
    %66 = arith.subf %53, %65 : vector<16x64xf32>
    %cst_29 = arith.constant 9.99999974E-6 : f32
    %67 = vector.broadcast %cst_29 : f32 to vector<16x1xf32>
    %68 = arith.addf %64, %67 : vector<16x1xf32>
    %69 = math.rsqrt %68 : vector<16x1xf32>
    %70 = vector.broadcast %69 : vector<16x1xf32> to vector<16x64xf32>
    %71 = arith.mulf %66, %70 : vector<16x64xf32>
    %72 = arith.index_cast %c1_i32 : i32 to index
    %c0_30 = arith.constant 0 : index
    %c0_31 = arith.constant 0 : index
    %73 = vector.load %arg6[%72, %c0_30, %c0_31] : memref<4x1x64xf32, #tpu.memory_space<vmem>>, vector<1x1x64xf32>
    %74 = vector.shape_cast %73 : vector<1x1x64xf32> to vector<1x64xf32>
    %75 = vector.broadcast %74 : vector<1x64xf32> to vector<16x64xf32>
    %76 = arith.mulf %71, %75 : vector<16x64xf32>
    %77 = arith.index_cast %c1_i32 : i32 to index
    %c0_32 = arith.constant 0 : index
    %c0_33 = arith.constant 0 : index
    %78 = vector.load %arg7[%77, %c0_32, %c0_33] : memref<4x1x64xf32, #tpu.memory_space<vmem>>, vector<1x1x64xf32>
    %79 = vector.shape_cast %78 : vector<1x1x64xf32> to vector<1x64xf32>
    %80 = vector.broadcast %79 : vector<1x64xf32> to vector<16x64xf32>
    %81 = arith.addf %76, %80 : vector<16x64xf32>
    %82 = arith.addf %44, %81 : vector<16x64xf32>
    %c2_i32 = arith.constant 2 : i32
    %83 = arith.index_cast %c2_i32 : i32 to index
    %c0_34 = arith.constant 0 : index
    %c0_35 = arith.constant 0 : index
    %84 = vector.load %arg4[%83, %c0_34, %c0_35] : memref<4x16x16xf32, #tpu.memory_space<vmem>>, vector<1x16x16xf32>
    %85 = vector.shape_cast %84 : vector<1x16x16xf32> to vector<16x16xf32>
    %cst_36 = arith.constant dense<0.000000e+00> : vector<16x64xf32>
    %86 = tpu.matmul %85, %82, %cst_36 {dimension_numbers = #tpu.dot_dimension_numbers<[1], [0], [0], [1], [0, 0, 1, 1], [], []>} : vector<16x16xf32>, vector<16x64xf32>, vector<16x64xf32> -> vector<16x64xf32>
    %87 = arith.index_cast %c2_i32 : i32 to index
    %c0_37 = arith.constant 0 : index
    %c0_38 = arith.constant 0 : index
    %88 = vector.load %arg5[%87, %c0_37, %c0_38] : memref<4x16x1xf32, #tpu.memory_space<vmem>>, vector<1x16x1xf32>
    %89 = vector.shape_cast %88 : vector<1x16x1xf32> to vector<16x1xf32>
    %90 = vector.broadcast %89 : vector<16x1xf32> to vector<16x64xf32>
    %91 = arith.addf %86, %90 : vector<16x64xf32>
    %cst_39 = arith.constant dense<0.000000e+00> : vector<16xf32>
    %92 = vector.multi_reduction <add>, %91, %cst_39 [1] : vector<16x64xf32> to vector<16xf32>
    %93 = vector.shape_cast %92 : vector<16xf32> to vector<16x1xf32>
    %cst_40 = arith.constant 6.400000e+01 : f32
    %94 = vector.broadcast %cst_40 : f32 to vector<16x1xf32>
    %95 = arith.divf %93, %94 : vector<16x1xf32>
    %96 = vector.broadcast %95 : vector<16x1xf32> to vector<16x64xf32>
    %97 = arith.subf %91, %96 : vector<16x64xf32>
    %98 = arith.mulf %97, %97 : vector<16x64xf32>
    %cst_41 = arith.constant dense<0.000000e+00> : vector<16xf32>
    %99 = vector.multi_reduction <add>, %98, %cst_41 [1] : vector<16x64xf32> to vector<16xf32>
    %100 = vector.shape_cast %99 : vector<16xf32> to vector<16x1xf32>
    %cst_42 = arith.constant 6.400000e+01 : f32
    %101 = vector.broadcast %cst_42 : f32 to vector<16x1xf32>
    %102 = arith.divf %100, %101 : vector<16x1xf32>
    %103 = vector.broadcast %95 : vector<16x1xf32> to vector<16x64xf32>
    %104 = arith.subf %91, %103 : vector<16x64xf32>
    %cst_43 = arith.constant 9.99999974E-6 : f32
    %105 = vector.broadcast %cst_43 : f32 to vector<16x1xf32>
    %106 = arith.addf %102, %105 : vector<16x1xf32>
    %107 = math.rsqrt %106 : vector<16x1xf32>
    %108 = vector.broadcast %107 : vector<16x1xf32> to vector<16x64xf32>
    %109 = arith.mulf %104, %108 : vector<16x64xf32>
    %110 = arith.index_cast %c2_i32 : i32 to index
    %c0_44 = arith.constant 0 : index
    %c0_45 = arith.constant 0 : index
    %111 = vector.load %arg6[%110, %c0_44, %c0_45] : memref<4x1x64xf32, #tpu.memory_space<vmem>>, vector<1x1x64xf32>
    %112 = vector.shape_cast %111 : vector<1x1x64xf32> to vector<1x64xf32>
    %113 = vector.broadcast %112 : vector<1x64xf32> to vector<16x64xf32>
    %114 = arith.mulf %109, %113 : vector<16x64xf32>
    %115 = arith.index_cast %c2_i32 : i32 to index
    %c0_46 = arith.constant 0 : index
    %c0_47 = arith.constant 0 : index
    %116 = vector.load %arg7[%115, %c0_46, %c0_47] : memref<4x1x64xf32, #tpu.memory_space<vmem>>, vector<1x1x64xf32>
    %117 = vector.shape_cast %116 : vector<1x1x64xf32> to vector<1x64xf32>
    %118 = vector.broadcast %117 : vector<1x64xf32> to vector<16x64xf32>
    %119 = arith.addf %114, %118 : vector<16x64xf32>
    %120 = arith.addf %82, %119 : vector<16x64xf32>
    %c3_i32 = arith.constant 3 : i32
    %121 = arith.index_cast %c3_i32 : i32 to index
    %c0_48 = arith.constant 0 : index
    %c0_49 = arith.constant 0 : index
    %122 = vector.load %arg4[%121, %c0_48, %c0_49] : memref<4x16x16xf32, #tpu.memory_space<vmem>>, vector<1x16x16xf32>
    %123 = vector.shape_cast %122 : vector<1x16x16xf32> to vector<16x16xf32>
    %cst_50 = arith.constant dense<0.000000e+00> : vector<16x64xf32>
    %124 = tpu.matmul %123, %120, %cst_50 {dimension_numbers = #tpu.dot_dimension_numbers<[1], [0], [0], [1], [0, 0, 1, 1], [], []>} : vector<16x16xf32>, vector<16x64xf32>, vector<16x64xf32> -> vector<16x64xf32>
    %125 = arith.index_cast %c3_i32 : i32 to index
    %c0_51 = arith.constant 0 : index
    %c0_52 = arith.constant 0 : index
    %126 = vector.load %arg5[%125, %c0_51, %c0_52] : memref<4x16x1xf32, #tpu.memory_space<vmem>>, vector<1x16x1xf32>
    %127 = vector.shape_cast %126 : vector<1x16x1xf32> to vector<16x1xf32>
    %128 = vector.broadcast %127 : vector<16x1xf32> to vector<16x64xf32>
    %129 = arith.addf %124, %128 : vector<16x64xf32>
    %cst_53 = arith.constant dense<0.000000e+00> : vector<16xf32>
    %130 = vector.multi_reduction <add>, %129, %cst_53 [1] : vector<16x64xf32> to vector<16xf32>
    %131 = vector.shape_cast %130 : vector<16xf32> to vector<16x1xf32>
    %cst_54 = arith.constant 6.400000e+01 : f32
    %132 = vector.broadcast %cst_54 : f32 to vector<16x1xf32>
    %133 = arith.divf %131, %132 : vector<16x1xf32>
    %134 = vector.broadcast %133 : vector<16x1xf32> to vector<16x64xf32>
    %135 = arith.subf %129, %134 : vector<16x64xf32>
    %136 = arith.mulf %135, %135 : vector<16x64xf32>
    %cst_55 = arith.constant dense<0.000000e+00> : vector<16xf32>
    %137 = vector.multi_reduction <add>, %136, %cst_55 [1] : vector<16x64xf32> to vector<16xf32>
    %138 = vector.shape_cast %137 : vector<16xf32> to vector<16x1xf32>
    %cst_56 = arith.constant 6.400000e+01 : f32
    %139 = vector.broadcast %cst_56 : f32 to vector<16x1xf32>
    %140 = arith.divf %138, %139 : vector<16x1xf32>
    %141 = vector.broadcast %133 : vector<16x1xf32> to vector<16x64xf32>
    %142 = arith.subf %129, %141 : vector<16x64xf32>
    %cst_57 = arith.constant 9.99999974E-6 : f32
    %143 = vector.broadcast %cst_57 : f32 to vector<16x1xf32>
    %144 = arith.addf %140, %143 : vector<16x1xf32>
    %145 = math.rsqrt %144 : vector<16x1xf32>
    %146 = vector.broadcast %145 : vector<16x1xf32> to vector<16x64xf32>
    %147 = arith.mulf %142, %146 : vector<16x64xf32>
    %148 = arith.index_cast %c3_i32 : i32 to index
    %c0_58 = arith.constant 0 : index
    %c0_59 = arith.constant 0 : index
    %149 = vector.load %arg6[%148, %c0_58, %c0_59] : memref<4x1x64xf32, #tpu.memory_space<vmem>>, vector<1x1x64xf32>
    %150 = vector.shape_cast %149 : vector<1x1x64xf32> to vector<1x64xf32>
    %151 = vector.broadcast %150 : vector<1x64xf32> to vector<16x64xf32>
    %152 = arith.mulf %147, %151 : vector<16x64xf32>
    %153 = arith.index_cast %c3_i32 : i32 to index
    %c0_60 = arith.constant 0 : index
    %c0_61 = arith.constant 0 : index
    %154 = vector.load %arg7[%153, %c0_60, %c0_61] : memref<4x1x64xf32, #tpu.memory_space<vmem>>, vector<1x1x64xf32>
    %155 = vector.shape_cast %154 : vector<1x1x64xf32> to vector<1x64xf32>
    %156 = vector.broadcast %155 : vector<1x64xf32> to vector<16x64xf32>
    %157 = arith.addf %152, %156 : vector<16x64xf32>
    %158 = arith.addf %120, %157 : vector<16x64xf32>
    %c4_i32 = arith.constant 4 : i32
    %c0_62 = arith.constant 0 : index
    %c0_63 = arith.constant 0 : index
    %159 = vector.load %arg8[%c0_62, %c0_63] : memref<64x64xf32, #tpu.memory_space<vmem>>, vector<64x64xf32>
    %cst_64 = arith.constant dense<0.000000e+00> : vector<16x64xf32>
    %160 = tpu.matmul %158, %159, %cst_64 {dimension_numbers = #tpu.dot_dimension_numbers<[1], [0], [0], [1], [0, 0, 1, 1], [], []>} : vector<16x64xf32>, vector<64x64xf32>, vector<16x64xf32> -> vector<16x64xf32>
    %c0_65 = arith.constant 0 : index
    %c0_66 = arith.constant 0 : index
    %161 = vector.load %arg9[%c0_65, %c0_66] : memref<1x64xf32, #tpu.memory_space<vmem>>, vector<1x64xf32>
    %162 = vector.broadcast %161 : vector<1x64xf32> to vector<16x64xf32>
    %163 = arith.addf %160, %162 : vector<16x64xf32>
    %c0_67 = arith.constant 0 : index
    %c0_68 = arith.constant 0 : index
    %c0_69 = arith.constant 0 : index
    %164 = vector.load %arg10[%c0_67, %c0_68, %c0_69] : memref<1x16x64xf32, #tpu.memory_space<vmem>>, vector<1x16x64xf32>
    %165 = vector.shape_cast %164 : vector<1x16x64xf32> to vector<16x64xf32>
    %166 = vector.shape_cast %163 : vector<16x64xf32> to vector<1x16x64xf32>
    tpu.vector_store %arg10[%c0_67, %c0_68, %c0_69], %166 {strides = array<i32>} : memref<1x16x64xf32, #tpu.memory_space<vmem>>, vector<1x16x64xf32>,
    return
  }
  func.func @transform_0(%arg0: i32) -> (i32, i32, i32) {
    %c0_i32 = arith.constant 0 : i32
    %c0_i32_0 = arith.constant 0 : i32
    %c0_i32_1 = arith.constant 0 : i32
    return %arg0, %c0_i32, %c0_i32_0 : i32, i32, i32
  }
  func.func @transform_1(%arg0: i32) -> (i32, i32) {
    %c0_i32 = arith.constant 0 : i32
    %c0_i32_0 = arith.constant 0 : i32
    %c0_i32_1 = arith.constant 0 : i32
    return %c0_i32, %c0_i32_0 : i32, i32
  }
  func.func @transform_2(%arg0: i32) -> (i32, i32) {
    %c0_i32 = arith.constant 0 : i32
    %c0_i32_0 = arith.constant 0 : i32
    %c0_i32_1 = arith.constant 0 : i32
    return %c0_i32, %c0_i32_0 : i32, i32
  }
  func.func @transform_3(%arg0: i32) -> (i32, i32, i32) {
    %c0_i32 = arith.constant 0 : i32
    %c0_i32_0 = arith.constant 0 : i32
    %c0_i32_1 = arith.constant 0 : i32
    %c0_i32_2 = arith.constant 0 : i32
    return %c0_i32, %c0_i32_0, %c0_i32_1 : i32, i32, i32
  }
  func.func @transform_4(%arg0: i32) -> (i32, i32, i32) {
    %c0_i32 = arith.constant 0 : i32
    %c0_i32_0 = arith.constant 0 : i32
    %c0_i32_1 = arith.constant 0 : i32
    %c0_i32_2 = arith.constant 0 : i32
    return %c0_i32, %c0_i32_0, %c0_i32_1 : i32, i32, i32
  }
  func.func @transform_5(%arg0: i32) -> (i32, i32, i32) {
    %c0_i32 = arith.constant 0 : i32
    %c0_i32_0 = arith.constant 0 : i32
    %c0_i32_1 = arith.constant 0 : i32
    %c0_i32_2 = arith.constant 0 : i32
    return %c0_i32, %c0_i32_0, %c0_i32_1 : i32, i32, i32
  }
  func.func @transform_6(%arg0: i32) -> (i32, i32, i32) {
    %c0_i32 = arith.constant 0 : i32
    %c0_i32_0 = arith.constant 0 : i32
    %c0_i32_1 = arith.constant 0 : i32
    %c0_i32_2 = arith.constant 0 : i32
    return %c0_i32, %c0_i32_0, %c0_i32_1 : i32, i32, i32
  }
  func.func @transform_7(%arg0: i32) -> (i32, i32) {
    %c0_i32 = arith.constant 0 : i32
    %c0_i32_0 = arith.constant 0 : i32
    %c0_i32_1 = arith.constant 0 : i32
    return %c0_i32, %c0_i32_0 : i32, i32
  }
  func.func @transform_8(%arg0: i32) -> (i32, i32) {
    %c0_i32 = arith.constant 0 : i32
    %c0_i32_0 = arith.constant 0 : i32
    %c0_i32_1 = arith.constant 0 : i32
    return %c0_i32, %c0_i32_0 : i32, i32
  }
  func.func @transform_9(%arg0: i32) -> (i32, i32, i32) {
    %c0_i32 = arith.constant 0 : i32
    %c0_i32_0 = arith.constant 0 : i32
    %c0_i32_1 = arith.constant 0 : i32
    return %arg0, %c0_i32, %c0_i32_0 : i32, i32, i32
  }
}

</mosaic_0001>

<bundles_post_ra>
// kernel: tpu_custom_call.1
= control target key start
LH: loop header
LB: loop body
LE: loop exit
PB: predicated region body
PF: predicated region fallthrough
CT: control target
= control target key end

     0   :  { %14 = vsyncpa [#allocation3], 0  ;;  %s2135_s0 = inlined_call_operand.hbm [shape: f32[2,16,64], index: 0, kind: input, shape index: {}]   ;;  %s2136_s1 = inlined_call_operand.vmem [shape: f32[64,64], index: 1, kind: input, shape index: {}]   ;;  %s2137_s2 = inlined_call_operand.vmem [shape: f32[1,64], index: 2, kind: input, shape index: {}]   ;;  %s2138_s3 = inlined_call_operand.hbm [shape: f32[4,16,16], index: 3, kind: input, shape index: {}]   ;;  %s2139_s4 = inlined_call_operand.vmem [shape: f32[4,16,1], index: 4, kind: input, shape index: {}]   ;;  %s2140_s5 = inlined_call_operand.vmem [shape: f32[4,1,64], index: 5, kind: input, shape index: {}]   ;;  %s2141_s6 = inlined_call_operand.vmem [shape: f32[4,1,64], index: 6, kind: input, shape index: {}]   ;;  %s2142_s7 = inlined_call_operand.hbm [shape: f32[64,64], index: 7, kind: input, shape index: {}]   ;;  %s2143_s8 = inlined_call_operand.vmem [shape: f32[1,64], index: 8, kind: input, shape index: {}]   ;;  %s2144_s9 = inlined_call_operand.hbm [shape: f32[2,16,64], index: 9, kind: output, shape index: {}]  }
   0x1   :  { %16 = vsyncpa [#allocation3 + $0x1], 0 }
   0x2   :  { %17 = vsyncpa [#allocation6], 0 }
   0x3   :  { %18 = vsyncpa [#allocation4], 0 }
   0x4   :  { %20 = vsyncpa [#allocation4 + $0x1], 0  ;;  %s1772_s30 = smov 0   ;;  %s1774_s10 = smov 0  }
   0x5   :  { %s1776_s11 = smov 0   ;;  %s1778_s12 = smov 0  }
   0x6 LB: > { %s1793_s13 = sadd.s32 4294967295, %s1711_s12   ;;  %s1261_s14 = sadd.s32 4294967294, %s1711_s12   ;;  %s1711_s12 = sphi %s1778_s12, %s2171_s12   ;;  %s1707_s11 = sphi %s1776_s11, %s2170_s11   ;;  %s1703_s10 = sphi %s1774_s10, %s2169_s10   ;;  %s1699_s30 = sphi %s1772_s30, %s2168_s30  }
   0x7   : > { %p46_p0 = scmp.ne.s32.totalorder %s1703_s10, %s1699_s30  ;;  %p2145_p1 = scmp.eq.s32.totalorder %s1793_s13, 0 }
   0x8   : > { %p244_p3 = scmp.eq.s32.totalorder %s1261_s14, 1  ;;  %p1262_p5 = scmp.ge.s32.totalorder %s1711_s12, 1 }
   0x9   : > { %p1802_p4 = por %p2145_p1, %p46_p0  ;;  %p251_p7 = scmp.lt.s32.totalorder %s1711_s12, 3 }
   0xa   : > { %p1807_p6 = por %p244_p3, %p46_p0  ;;  %s1713_s18 = smov [#allocation5]  }
   0xb   : > { %s2151_s15 = scalar_select %p1802_p4, 1, 0 }
   0xc   : > { %s2152_s16 = scalar_select %p1807_p6, 1, 0 }
   0xd   : > { %p1812_p8 = pnand %p1262_p5, %p251_p7  ;;  %s269_s19 = sshll.u32 %s1713_s18, 4  ;;  %s1816_s19 = int_to_ptr.vmem [resolvable:$true] %s269_s19 }
   0xe   : > { %2153 = sst [smem:[#allocation12_spill]] %s2152_s16  ;;  %s1714_s21 = smov [#allocation7]  }
   0xf   : > { %p1477_p9 = pneg %p1812_p8  ;;  %s291_s22 = sshll.u32 %s1714_s21, 4  ;;  %s1827_s22 = int_to_ptr.vmem [resolvable:$true] %s291_s22 }
  0x10   : > { %s1555_s25 = scalar_lea.hbm %s2138_s3, 1024 }
  0x11   : > { %p1823_p11 = pnand %p1477_p9, %p2145_p1  ;;  %p1556_p12 = scmp.ne.s32.totalorder %s2138_s3, %s1555_s25 }
  0x12   : > { %p1562_p5 = scmp.lt.u32.totalorder %s1555_s25, %s2138_s3 }
  0x13   : > { %p1557_p13 = pneg %p1823_p11 }
  0x15   : > { %p1558_p0 = pnand %p1557_p13, %p1556_p12 }
  0x17   : > { %p1559_p3 = pneg %p1558_p0 }
  0x19   : > { %p1564_p7 = pnand %p1562_p5, %p1559_p3 }
  0x1b   : > { %1567 = shalt.err (!%p1564_p7)
}
  0x1c   : > { %s1568_s14 = scalar_lea.vmem %s1816_s19, 1024  ;;  %p1576_p2 = scmp.lt.s32.totalorder %s1816_s19, %s1816_s19 }
  0x1d   : > { %p1569_p9 = scmp.ne.s32.totalorder %s1816_s19, %s1568_s14  ;;  %p1577_p12 = scmp.lt.s32.totalorder %s1568_s14, %s1568_s14 }
  0x1f   : > { %p1571_p10 = pnand %p1569_p9, %p1557_p13  ;;  %p1578_p0 = por %p1577_p12, %p1576_p2 }
  0x21   : > { %p1572_p1 = pneg %p1571_p10 }
  0x23   : > { %p1579_p6 = pnand %p1578_p0, %p1572_p1 }
  0x25   : > { %1582 = shalt.err (!%p1579_p6)
}
  0x26   : > { %s2147_s18 = smov 128   ;;  %s2148_s21 = smov 8  }
  0x27   : > { %1480 = dma.hbm_to_vmem [thread:$0]  (!%p1823_p11), %s2138_s3, 1024, %s1816_s19, [#allocation6], %s2147_s18, %s2147_s18, %s2148_s21  }
  0x28   : > { %s1583_s27 = scalar_lea.hbm %s2142_s7, 1024 }
  0x29   : > { %p1584_p1 = scmp.ne.s32.totalorder %s2142_s7, %s1583_s27  ;;  %p1590_p10 = scmp.lt.u32.totalorder %s1583_s27, %s2142_s7 }
  0x2b   : > { %p1586_p2 = pnand %p1584_p1, %p1557_p13 }
  0x2d   : > { %p1587_p6 = pneg %p1586_p2 }
  0x2f   : > { %p1592_p3 = pnand %p1590_p10, %p1587_p6 }
  0x31   : > { %1595 = shalt.err (!%p1592_p3)
}
  0x32   : > { %s1596_s19 = scalar_lea.vmem %s1827_s22, 1024  ;;  %p1604_p12 = scmp.lt.s32.totalorder %s1827_s22, %s1827_s22 }
  0x33   : > { %p1597_p5 = scmp.ne.s32.totalorder %s1827_s22, %s1596_s19  ;;  %p1605_p0 = scmp.lt.s32.totalorder %s1596_s19, %s1596_s19 }
  0x35   : > { %p1599_p7 = pnand %p1597_p5, %p1557_p13  ;;  %p1606_p1 = por %p1605_p0, %p1604_p12 }
  0x37   : > { %p1600_p9 = pneg %p1599_p7 }
  0x39   : > { %p1607_p2 = pnand %p1606_p1, %p1600_p9 }
  0x3b   : > { %1610 = shalt.err (!%p1607_p2)
}
  0x3c   : > { %1483 = dma.hbm_to_vmem [thread:$0]  (!%p1823_p11), %s2142_s7, 1024, %s1827_s22, [#allocation6], %s2147_s18, %s2147_s18, %s2148_s21  }
  0x3d   : > { %s1888_s20 = sadd.s32 1, %s1711_s12   ;;  %s33_s24 = sadd.s32 1, %s1707_s11 }
  0x3e   : > { %s30_s25 = ssub.s32 %s1711_s12, %s1888_s20  ;;  %p40_p13 = scmp.ne.s32.totalorder %s1707_s11, %s1703_s10 }
  0x3f   : > { %p31_p6 = scmp.eq.s32.totalorder %s30_s25, 0  ;;  %p41_p10 = scmp.eq.s32.totalorder %s1711_s12, 0 }
  0x40   : > { %p2156_p3 = scmp.eq.s32.totalorder %s1793_s13, 1  ;;  %p1494_p7 = scmp.lt.s32.totalorder %s1711_s12, 2 }
  0x41   : > { %s1904_s27 = scalar_select %p31_p6, %s1707_s11, %s33_s24  }
  0x42   : > { %p1898_p5 = por %p2156_p3, %p40_p13  ;;  %p42_p9 = por %p41_p10, %p40_p13 }
  0x43   : > { %s308_s28 = sand.u32 1, %s1707_s11   ;;  %s1313_s22 = sshll.u32 %s1711_s12, 8 }
  0x44   : > { %s2157_s26 = scalar_select %p1898_p5, 1, 0 }
  0x45   : > { %s1266_s29 = sshll.u32 %s308_s28, 4  ;;  %s1911_s16 = scalar_lea.hbm %s2135_s0, %s1313_s22 }
  0x46   : > { %s312_s23 = scalar_lea.vmem [#allocation2], %s1266_s29  ;;  %p1915_p11 = pnand %p1494_p7, %p42_p9 }
  0x47   : > { %s319_s25 = sshll.u32 %s312_s23, 4  ;;  %s1919_s18 = scalar_lea.sflag [#allocation3], %s308_s28  ;;  %s1913_s25 = int_to_ptr.vmem [resolvable:$true] %s319_s25 }
  0x48   : > { %s1611_s21 = scalar_lea.hbm %s1911_s16, 256  ;;  %p1613_p0 = pneg %p1915_p11 }
  0x49   : > { %p1612_p12 = scmp.ne.s32.totalorder %s1911_s16, %s1611_s21  ;;  %s1616_s14 = scalar_lea.hbm %s2135_s0, 512 }
  0x4a   : > { %p1617_p13 = scmp.lt.u32.totalorder %s1911_s16, %s2135_s0  ;;  %p1618_p6 = scmp.lt.u32.totalorder %s1616_s14, %s1611_s21 }
  0x4b   : > { %p1614_p1 = pnand %p1613_p0, %p1612_p12  ;;  %p1620_p3 = scmp.lt.u32.totalorder %s1611_s21, %s1911_s16 }
  0x4c   : > { %p1619_p10 = por %p1618_p6, %p1617_p13 }
  0x4d   : > { %p1615_p2 = pneg %p1614_p1 }
  0x4e   : > { %p1621_p7 = por %p1620_p3, %p1619_p10 }
  0x50   : > { %p1622_p9 = pnand %p1621_p7, %p1615_p2 }
  0x52   : > { %1625 = shalt.err (!%p1622_p9)
}
  0x53   : > { %s1626_s28 = scalar_lea.vmem %s1913_s25, 256  ;;  %s1717_s29 = smov [#allocation2]  }
  0x54   : > { %p1627_p12 = scmp.ne.s32.totalorder %s1913_s25, %s1626_s28  ;;  %s1631_s22 = sshll.u32 %s1717_s29, 4  ;;  %s1632_s22 = int_to_ptr.vmem [resolvable:$false] %s1631_s22 }
  0x55   : > { %s1633_s19 = scalar_lea.vmem %s1632_s22, 512  ;;  %p1634_p4 = scmp.lt.s32.totalorder %s1913_s25, %s1632_s22 }
  0x56   : > { %p1629_p1 = pnand %p1627_p12, %p1613_p0  ;;  %p1635_p13 = scmp.lt.s32.totalorder %s1633_s19, %s1626_s28 }
  0x58   : > { %p1630_p5 = pneg %p1629_p1  ;;  %p1636_p6 = por %p1635_p13, %p1634_p4 }
  0x5a   : > { %p1637_p10 = pnand %p1636_p6, %p1630_p5 }
  0x5c   : > { %1640 = shalt.err (!%p1637_p10)
}
  0x5d   : > { %s2159_s21 = smov 8   ;;  %s2160_s14 = smov 128  }
  0x5e   : > { %1487 = dma.hbm_to_vmem [thread:$0]  (!%p1915_p11), %s1911_s16, 256, %s1913_s25, %s1919_s18, %s2160_s14, %s2160_s14, %s2159_s21  }
  0x5f   : > { %331 = sbr.rel (%p1812_p8) target bundleno = 2730 (0xaaa), region = 56  ;;  %s1953_s23 = sand.u32 (!%p1812_p8), 1, %s1703_s10  }
  0x60   : > { %s1270_s28 = sshll.u32 (!%p1812_p8), %s1953_s23, 4  ;;  %s334_s29 = scalar_lea.sflag (!%p1812_p8), [#allocation3], %s1953_s23 }
  0x61   : > { %s337_s24 = scalar_lea.vmem (!%p1812_p8), [#allocation2], %s1270_s28  ;;  %p2161_p4 = scmp.ne.s32.totalorder (!%p1812_p8), %s2151_s15, 0 }
  0x66   : > { %1686 = dma.done.wait (%p2161_p4), %s334_s29, 256  }
  0x67   : > { %1688 = vsyncadd (%p2161_p4), %s334_s29, 4294967040  ;;  %p2162_p5 = scmp.eq.s32.totalorder %s1793_s13, 0 }
  0x69   : > { %1690 = dma.done.wait (%p2162_p5), [#allocation6], 2048   ;;  %p2163_p8 = pmov %p2162_p5 }
  0x6a   : > { %v382_v0 = vld [vmem:[%s2136_s1] sm:$0xff]  ;;  %v383_v1 = vld [vmem:[%s2136_s1 + $0x8] sm:$0xff]  ;;  %v384_v2 = vld [vmem:[%s2136_s1 + $0x10] sm:$0xff]  ;;  %vm397_vm0 = vcmask 523264   ;;  %vm493_vm1 = vcmask 130048   ;;  %v1718_v16 = vmov 0  }
  0x6b   : > { %1692 = vsyncadd (%p2163_p8), [#allocation6], 4294965248  ;;  %v1417_v3 = vpack.c.bf16 %v383_v1, %v382_v0  ;;  %v385_v4 = vld [vmem:[%s2136_s1 + $0x18] sm:$0xff]  ;;  %v386_v6 = vld [vmem:[%s2136_s1 + $0x20] sm:$0xff]  ;;  %1537 = vset.pattern.permute.xlu0 %v1718_v16  ;;  %1538 = vset.pattern.permute.xlu1 %v1718_v16  ;;  %s379_s21 = scalar_lea.vmem [#allocation8], %s1270_s28  ;;  %s1314_s17 = sshll.u32 %s1793_s13, 8 }
  0x6c   : > { %v1421_v5 = vpack.c.bf16 %v385_v4, %v384_v2  ;;  %v387_v7 = vld [vmem:[%s2136_s1 + $0x28] sm:$0xff]  ;;  %v380_v8 = vld [vmem:[%s337_s24] sm:$0xff]  ;;  %v389_v11 = vld [vmem:[%s2136_s1 + $0x38] sm:$0xff]  ;;  %s1169_s14 = sshll.u32 %s379_s21, 4  ;;  %s2089_s25 = scalar_lea.hbm %s2144_s9, %s1314_s17  ;;  %s2084_s14 = int_to_ptr.vmem [resolvable:$true] %s1169_s14 }
  0x6d   : > { %1418 = vmatprep.subr.bf16.mxu0 %v1417_v3  ;;  %1367 = vmatprep.mubr.msk.f32.mxu0 %vm397_vm0, %v380_v8  ;;  %v1425_v9 = vpack.c.bf16 %v387_v7, %v386_v6  ;;  %v388_v10 = vld [vmem:[%s2136_s1 + $0x30] sm:$0xff]  ;;  %v381_v13 = vld [vmem:[%s337_s24 + $0x8] sm:$0xff]  ;;  %v479_v14 = vld [vmem:[#allocation5] sm:$0xff]  ;;  %s1156_s28 = scalar_lea.sflag [#allocation4], %s1953_s23  ;;  %s1641_s13 = scalar_lea.vmem %s2084_s14, 256 }
  0x6e   : > { %1420 = vmatpush3.bf16.msra.mxu0 %v1417_v3  ;;  %v1429_v12 = vpack.c.bf16 %v389_v11, %v388_v10  ;;  %1374 = vmatprep.mubr.msk.f32.mxu1 %vm493_vm1, %v479_v14  ;;  %v481_v15 = vld [vmem:[%s2139_s4] sm:$0xff]  ;;  %v482_v17 = vld [vmem:[%s2139_s4 + $0x8] sm:$0xff]  ;;  %v623_v43 = vld [vmem:[#allocation5 + $0x10] sm:$0xff]  ;;  %p1642_p11 = scmp.ne.s32.totalorder %s2084_s14, %s1641_s13  ;;  %p2164_p0 = scmp.ne.s32.totalorder %s2157_s26, 0 }
  0x6f   : > { %1422 = vmatprep.subr.bf16.mxu0 %v1421_v5  ;;  %485 = vperm.xlu0 %1537, %v481_v15   ;;  %v1274_v18 = vld [vmem:[%s2137_s2] ss:$0 sm:$0xff]  ;;  %v480_v24 = vld [vmem:[#allocation5 + $0x8] sm:$0xff]  ;;  %v1281_v44 = vld [vmem:[%s2139_s4 + $0x10] sm:$0xff]  ;;  %s1719_s22 = smov [#allocation8]  }
  0x70   : > { %v1282_v45 = vld [vmem:[%s2139_s4 + $0x18] sm:$0xff]  ;;  %v1279_v53 = vld [vmem:[%s2140_s5] ss:$0 sm:$0xff]  ;;  %v1290_v10 = vld [vmem:[%s2139_s4 + $0x28] sm:$0xff]  ;;  %p1643_p2 = pnand %p1642_p11, %p2164_p0  ;;  %s1645_s19 = sshll.u32 %s1719_s22, 4  ;;  %s1646_s19 = int_to_ptr.vmem [resolvable:$false] %s1645_s19 }
  0x71   : > { %v1280_v57 = vld [vmem:[%s2141_s6] ss:$0 sm:$0xff]  ;;  %v624_v1 = vld [vmem:[#allocation5 + $0x18] sm:$0xff]  ;;  %s1647_s15 = scalar_lea.vmem %s1646_s19, 512  ;;  %p1648_p7 = scmp.lt.s32.totalorder %s2084_s14, %s1646_s19 }
  0x72   : > { %1424 = vmatpush3.bf16.msra.mxu0 %v1421_v5  ;;  %p1644_p3 = pneg %p1643_p2  ;;  %p1649_p9 = scmp.lt.s32.totalorder %s1647_s15, %s1641_s13 }
  0x73   : > { %1426 = vmatprep.subr.bf16.mxu0 %v1425_v9  ;;  %490 = vperm.xlu0 %1537, %v482_v17  }
  0x74   : > { %p1650_p12 = por %p1649_p9, %p1648_p7 }
  0x76   : > { %1428 = vmatpush3.bf16.msra.mxu0 %v1425_v9  ;;  %p1651_p1 = pnand %p1650_p12, %p1644_p3 }
  0x77   : > { %1430 = vmatprep.subr.bf16.mxu0 %v1429_v12 }
  0x7a   : > { %1432 = vmatpush3.bf16.msra.mxu0 %v1429_v12 }
  0x7d   : > { %1368 = vmatmul.mubr.msk.f32.vlgmr.msra.gmra.mrb[0].mxu0 %vm397_vm0, %v381_v13 }
  0xee   : > { %v486_v25 = vpop.permute.xlu0 %485 }
  0xf2   : > { %v491_v27 = vpop.permute.xlu0 %490 }
 0x150   : > { %v1369_v19 = vpop.f32.mrb[0].mxu0 }
 0x151   : > { %v476_v20 = vadd.f32 %v1369_v19, %v1274_v18  ;;  %v470_v21 = vpop.f32.mrb[1].mxu0 }
 0x152   : > { %v471_v22 = vadd.f32 %v1274_v18, %v470_v21  ;;  %v1289_v21 = vld [vmem:[%s2139_s4 + $0x20] sm:$0xff] }
 0x154   : > { %v1433_v23 = vpack.c.bf16 %v476_v20, %v471_v22 }
 0x156   : > { %1434 = vmatprep.subr.bf16.mxu1 %v1433_v23 }
 0x157   : > { %1436 = vmatpush3.bf16.msra.mxu1 %v1433_v23 }
 0x15a   : > { %1375 = vmatmul.mubr.msk.f32.vlgmr.msra.gmra.mrb[0].mxu1 %vm493_vm1, %v480_v24 }
 0x15b   : > { %1381 = vmatprep.mubr.msk.f32.mxu1 %vm493_vm1, %v623_v43 }
 0x22d   : > { %v1376_v26 = vpop.f32.mrb[0].mxu1 }
 0x22e   : > { %v566_v28 = vpop.f32.mrb[1].mxu1  ;;  %v572_v30 = vadd.f32 %v1376_v26, %v491_v27 }
 0x22f   : > { %v567_v29 = vadd.f32 %v566_v28, %v486_v25 }
 0x230   : > { %v578_v32 = vsel %vm397_vm0, %v572_v30, 0.0 }
 0x231   : > { %v575_v31 = vsel %vm397_vm0, %v567_v29, 0.0 }
 0x232   : > { %576 = vadd.xlane.f32.xlu1 %v575_v31 }
 0x236   : > { %579 = vadd.xlane.f32.xlu1 %v578_v32 }
 0x2bf   : > { %v577_v33 = vpop.xlane.xlu1 %576 }
 0x2c0   : > { %v582_v34 = vmul.f32 0.015625, %v577_v33 }
 0x2c2   : > { %v584_v35 = vsub.f32 %v567_v29, %v582_v34  ;;  %v1288_v34 = vld [vmem:[%s2141_s6 + $0x1] ss:$0 sm:$0xff] }
 0x2c3   : > { %v580_v36 = vpop.xlane.xlu1 %579 }
 0x2c4   : > { %v583_v37 = vmul.f32 0.015625, %v580_v36  ;;  %v586_v38 = vmul.f32 %v584_v35, %v584_v35 }
 0x2c6   : > { %v585_v39 = vsub.f32 %v572_v30, %v583_v37  ;;  %v588_v40 = vsel %vm397_vm0, %v586_v38, 0.0  ;;  %v1286_v30 = vld [vmem:[%s2140_s5 + $0x1] ss:$0 sm:$0xff] }
 0x2c7   : > { %589 = vadd.xlane.f32.xlu0 %v588_v40 }
 0x2c8   : > { %v587_v41 = vmul.f32 %v585_v39, %v585_v39 }
 0x2ca   : > { %v591_v42 = vsel %vm397_vm0, %v587_v41, 0.0 }
 0x2cb   : > { %592 = vadd.xlane.f32.xlu1 %v591_v42  ;;  %v769_v42 = vld [vmem:[#allocation5 + $0x28] sm:$0xff] }
 0x2dc   : > { %630 = vperm.xlu1 %1538, %v1281_v44  }
 0x2e0   : > { %635 = vperm.xlu1 %1538, %v1282_v45  }
 0x354   : > { %v590_v46 = vpop.xlane.xlu0 %589 }
 0x355   : > { %v594_v47 = vmul.f32 0.015625, %v590_v46 }
 0x357   : > { %v596_v48 = vadd.f32 1e-05, %v594_v47 }
 0x358   : > { %v593_v49 = vpop.xlane.xlu1 %592 }
 0x359   : > { %1539 = vrsqrt.f32 %v596_v48  ;;  %v595_v50 = vmul.f32 0.015625, %v593_v49 }
 0x35b   : > { %v597_v51 = vadd.f32 1e-05, %v595_v50 }
 0x35c   : > { %v631_v2 = vpop.permute.xlu1 %630 }
 0x35d   : > { %1541 = vrsqrt.f32 %v597_v51  ;;  %v1298_v51 = vld [vmem:[%s2139_s4 + $0x38] sm:$0xff] }
 0x360   : > { %v636_v3 = vpop.permute.xlu1 %635 }
 0x363   : > { %v1540_v52 = vpop.eup %1539 }
 0x364   : > { %v600_v54 = vmul.f32 %v1540_v52, %v584_v35 }
 0x366   : > { %v609_v55 = vmul.f32 %v1279_v53, %v600_v54 }
 0x367   : > { %v1542_v56 = vpop.eup %1541 }
 0x368   : > { %v601_v58 = vmul.f32 %v1542_v56, %v585_v39  ;;  %v618_v60 = vadd.f32 %v1280_v57, %v609_v55 }
 0x36a   : > { %v610_v59 = vmul.f32 %v1279_v53, %v601_v58  ;;  %v620_v62 = vadd.f32 %v618_v60, %v471_v22  ;;  %v768_v22 = vld [vmem:[#allocation5 + $0x20] sm:$0xff] }
 0x36c   : > { %v619_v61 = vadd.f32 %v1280_v57, %v610_v59 }
 0x36e   : > { %v621_v63 = vadd.f32 %v619_v61, %v476_v20 }
 0x370   : > { %v1437_v0 = vpack.c.bf16 %v621_v63, %v620_v62 }
 0x372   : > { %1438 = vmatprep.subr.bf16.mxu1 %v1437_v0 }
 0x373   : > { %1440 = vmatpush3.bf16.msra.mxu1 %v1437_v0 }
 0x376   : > { %1382 = vmatmul.mubr.msk.f32.vlgmr.msra.gmra.mrb[2].mxu1 %vm493_vm1, %v624_v1 }
 0x377   : > { %1388 = vmatprep.mubr.msk.f32.mxu1 %vm493_vm1, %v768_v22 }
 0x449   : > { %v1383_v4 = vpop.f32.mrb[2].mxu1 }
 0x44a   : > { %v716_v5 = vadd.f32 %v1383_v4, %v636_v3  ;;  %v710_v6 = vpop.f32.mrb[3].mxu1 }
 0x44b   : > { %v711_v7 = vadd.f32 %v710_v6, %v631_v2 }
 0x44c   : > { %v722_v8 = vsel %vm397_vm0, %v716_v5, 0.0 }
 0x44d   : > { %723 = vadd.xlane.f32.xlu0 %v722_v8  ;;  %v719_v9 = vsel %vm397_vm0, %v711_v7, 0.0 }
 0x44e   : > { %720 = vadd.xlane.f32.xlu1 %v719_v9 }
 0x45f   : > { %780 = vperm.xlu1 %1538, %v1290_v10  }
 0x4da   : > { %v724_v11 = vpop.xlane.xlu0 %723 }
 0x4db   : > { %v726_v12 = vmul.f32 0.015625, %v724_v11  ;;  %v721_v13 = vpop.xlane.xlu1 %720  ;;  %v1296_v11 = vld [vmem:[%s2141_s6 + $0x2] ss:$0 sm:$0xff] }
 0x4dc   : > { %v725_v14 = vmul.f32 0.015625, %v721_v13 }
 0x4dd   : > { %v728_v15 = vsub.f32 %v716_v5, %v726_v12 }
 0x4de   : > { %v727_v16 = vsub.f32 %v711_v7, %v725_v14  ;;  %v1294_v7 = vld [vmem:[%s2140_s5 + $0x2] ss:$0 sm:$0xff] }
 0x4df   : > { %v730_v19 = vmul.f32 %v728_v15, %v728_v15  ;;  %v781_v43 = vpop.permute.xlu1 %780 }
 0x4e0   : > { %v729_v17 = vmul.f32 %v727_v16, %v727_v16 }
 0x4e1   : > { %v734_v20 = vsel %vm397_vm0, %v730_v19, 0.0  ;;  %v914_v19 = vld [vmem:[#allocation5 + $0x38] sm:$0xff] }
 0x4e2   : > { %v731_v18 = vsel %vm397_vm0, %v729_v17, 0.0 }
 0x4e3   : > { %732 = vadd.xlane.f32.xlu0 %v731_v18 }
 0x4e7   : > { %735 = vadd.xlane.f32.xlu0 %v734_v20 }
 0x4fd   : > { %775 = vperm.xlu0 %1537, %v1289_v21  }
 0x570   : > { %v733_v23 = vpop.xlane.xlu0 %732 }
 0x571   : > { %v737_v24 = vmul.f32 0.015625, %v733_v23 }
 0x573   : > { %v739_v25 = vadd.f32 1e-05, %v737_v24 }
 0x574   : > { %v736_v26 = vpop.xlane.xlu0 %735 }
 0x575   : > { %1543 = vrsqrt.f32 %v739_v25  ;;  %v738_v27 = vmul.f32 0.015625, %v736_v26 }
 0x577   : > { %v740_v28 = vadd.f32 1e-05, %v738_v27 }
 0x579   : > { %1545 = vrsqrt.f32 %v740_v28 }
 0x57c   : > { %v776_v45 = vpop.permute.xlu0 %775 }
 0x57f   : > { %v1544_v29 = vpop.eup %1543 }
 0x580   : > { %v743_v31 = vmul.f32 %v1544_v29, %v727_v16 }
 0x582   : > { %v753_v32 = vmul.f32 %v1286_v30, %v743_v31 }
 0x583   : > { %v1546_v33 = vpop.eup %1545 }
 0x584   : > { %v744_v35 = vmul.f32 %v1546_v33, %v728_v15  ;;  %v763_v37 = vadd.f32 %v1288_v34, %v753_v32 }
 0x586   : > { %v754_v36 = vmul.f32 %v1286_v30, %v744_v35  ;;  %v765_v39 = vadd.f32 %v763_v37, %v620_v62  ;;  %v1297_v62 = vld [vmem:[%s2139_s4 + $0x30] sm:$0xff] }
 0x588   : > { %v764_v38 = vadd.f32 %v1288_v34, %v754_v36 }
 0x58a   : > { %v766_v40 = vadd.f32 %v764_v38, %v621_v63  ;;  %v913_v63 = vld [vmem:[#allocation5 + $0x30] sm:$0xff]  ;;  %v1057_v38 = vld [vmem:[#allocation7] sm:$0xff] }
 0x58c   : > { %v1441_v41 = vpack.c.bf16 %v766_v40, %v765_v39 }
 0x58e   : > { %1442 = vmatprep.subr.bf16.mxu1 %v1441_v41 }
 0x58f   : > { %1444 = vmatpush3.bf16.msra.mxu1 %v1441_v41  ;;  %v1059_v41 = vld [vmem:[#allocation7 + $0x10] sm:$0xff] }
 0x592   : > { %1389 = vmatmul.mubr.msk.f32.vlgmr.msra.gmra.mrb[4].mxu1 %vm493_vm1, %v769_v42  ;;  %v1060_v42 = vld [vmem:[#allocation7 + $0x18] sm:$0xff] }
 0x593   : > { %1395 = vmatprep.mubr.msk.f32.mxu1 %vm493_vm1, %v913_v63 }
 0x665   : > { %v1390_v44 = vpop.f32.mrb[4].mxu1 }
 0x666   : > { %v861_v46 = vadd.f32 %v1390_v44, %v781_v43  ;;  %v855_v47 = vpop.f32.mrb[5].mxu1  ;;  %v1453_v43 = vpack.c.bf16 %v1060_v42, %v1059_v41  ;;  %v1061_v44 = vld [vmem:[#allocation7 + $0x20] sm:$0xff] }
 0x667   : > { %v856_v48 = vadd.f32 %v855_v47, %v776_v45  ;;  %v1062_v45 = vld [vmem:[#allocation7 + $0x28] sm:$0xff]  ;;  %v1063_v47 = vld [vmem:[#allocation7 + $0x30] sm:$0xff] }
 0x668   : > { %v867_v49 = vsel %vm397_vm0, %v861_v46, 0.0 }
 0x669   : > { %868 = vadd.xlane.f32.xlu1 %v867_v49  ;;  %v864_v50 = vsel %vm397_vm0, %v856_v48, 0.0 }
 0x66a   : > { %865 = vadd.xlane.f32.xlu0 %v864_v50 }
 0x67a   : > { %925 = vperm.xlu1 %1538, %v1298_v51  }
 0x6f6   : > { %v869_v52 = vpop.xlane.xlu1 %868 }
 0x6f7   : > { %v871_v53 = vmul.f32 0.015625, %v869_v52  ;;  %v866_v54 = vpop.xlane.xlu0 %865 }
 0x6f8   : > { %v870_v55 = vmul.f32 0.015625, %v866_v54 }
 0x6f9   : > { %v873_v56 = vsub.f32 %v861_v46, %v871_v53  ;;  %v1457_v46 = vpack.c.bf16 %v1062_v45, %v1061_v44 }
 0x6fa   : > { %v872_v57 = vsub.f32 %v856_v48, %v870_v55  ;;  %v926_v20 = vpop.permute.xlu1 %925  ;;  %v1064_v48 = vld [vmem:[#allocation7 + $0x38] sm:$0xff] }
 0x6fb   : > { %v875_v60 = vmul.f32 %v873_v56, %v873_v56  ;;  %v1461_v49 = vpack.c.bf16 %v1064_v48, %v1063_v47 }
 0x6fc   : > { %v874_v58 = vmul.f32 %v872_v57, %v872_v57 }
 0x6fd   : > { %v879_v61 = vsel %vm397_vm0, %v875_v60, 0.0 }
 0x6fe   : > { %v876_v59 = vsel %vm397_vm0, %v874_v58, 0.0 }
 0x6ff   : > { %877 = vadd.xlane.f32.xlu0 %v876_v59  ;;  %v1304_v59 = vld [vmem:[%s2141_s6 + $0x3] ss:$0 sm:$0xff] }
 0x703   : > { %880 = vadd.xlane.f32.xlu0 %v879_v61 }
 0x719   : > { %920 = vperm.xlu0 %1537, %v1297_v62  }
 0x78c   : > { %v878_v0 = vpop.xlane.xlu0 %877 }
 0x78d   : > { %v882_v1 = vmul.f32 0.015625, %v878_v0 }
 0x78f   : > { %v884_v2 = vadd.f32 1e-05, %v882_v1 }
 0x790   : > { %v881_v3 = vpop.xlane.xlu0 %880 }
 0x791   : > { %1547 = vrsqrt.f32 %v884_v2  ;;  %v883_v4 = vmul.f32 0.015625, %v881_v3 }
 0x793   : > { %v885_v5 = vadd.f32 1e-05, %v883_v4  ;;  %v1305_v4 = vld [vmem:[%s2143_s8] ss:$0 sm:$0xff] }
 0x795   : > { %1549 = vrsqrt.f32 %v885_v5 }
 0x798   : > { %v921_v22 = vpop.permute.xlu0 %920 }
 0x79b   : > { %v1548_v6 = vpop.eup %1547 }
 0x79c   : > { %v888_v8 = vmul.f32 %v1548_v6, %v872_v57  ;;  %v1302_v57 = vld [vmem:[%s2140_s5 + $0x3] ss:$0 sm:$0xff] }
 0x79e   : > { %v898_v9 = vmul.f32 %v1294_v7, %v888_v8 }
 0x79f   : > { %v1550_v10 = vpop.eup %1549 }
 0x7a0   : > { %v889_v12 = vmul.f32 %v1550_v10, %v873_v56  ;;  %v908_v14 = vadd.f32 %v1296_v11, %v898_v9 }
 0x7a2   : > { %v899_v13 = vmul.f32 %v1294_v7, %v889_v12  ;;  %v2057_v16 = vadd.f32 %v908_v14, %v765_v39  ;;  %v1058_v39 = vld [vmem:[#allocation7 + $0x8] sm:$0xff] }
 0x7a4   : > { %v909_v15 = vadd.f32 %v1296_v11, %v899_v13 }
 0x7a6   : > { %v2059_v17 = vadd.f32 %v909_v15, %v766_v40  ;;  %v1449_v40 = vpack.c.bf16 %v1058_v39, %v1057_v38 }
 0x7a8   : > { %v1445_v18 = vpack.c.bf16 %v2059_v17, %v2057_v16  ;;  %1450 = vmatprep.subr.bf16.mxu0 %v1449_v40 }
 0x7a9   : > { %1452 = vmatpush3.bf16.msra.mxu0 %v1449_v40 }
 0x7aa   : > { %1446 = vmatprep.subr.bf16.mxu1 %v1445_v18  ;;  %1454 = vmatprep.subr.bf16.mxu0 %v1453_v43 }
 0x7ab   : > { %1448 = vmatpush3.bf16.msra.mxu1 %v1445_v18 }
 0x7ad   : > { %1456 = vmatpush3.bf16.msra.mxu0 %v1453_v43 }
 0x7ae   : > { %1396 = vmatmul.mubr.msk.f32.vlgmr.msra.gmra.mrb[6].mxu1 %vm493_vm1, %v914_v19  ;;  %1458 = vmatprep.subr.bf16.mxu0 %v1457_v46 }
 0x7b1   : > { %1460 = vmatpush3.bf16.msra.mxu0 %v1457_v46 }
 0x7b2   : > { %1462 = vmatprep.subr.bf16.mxu0 %v1461_v49 }
 0x7b5   : > { %1464 = vmatpush3.bf16.msra.mxu0 %v1461_v49 }
 0x881   : > { %v1397_v21 = vpop.f32.mrb[6].mxu1 }
 0x882   : > { %v1006_v23 = vadd.f32 %v1397_v21, %v926_v20  ;;  %v1000_v24 = vpop.f32.mrb[7].mxu1 }
 0x883   : > { %v1001_v25 = vadd.f32 %v1000_v24, %v921_v22 }
 0x884   : > { %v1012_v26 = vsel %vm397_vm0, %v1006_v23, 0.0 }
 0x885   : > { %1013 = vadd.xlane.f32.xlu1 %v1012_v26  ;;  %v1009_v27 = vsel %vm397_vm0, %v1001_v25, 0.0 }
 0x886   : > { %1010 = vadd.xlane.f32.xlu0 %v1009_v27 }
 0x912   : > { %v1014_v28 = vpop.xlane.xlu1 %1013 }
 0x913   : > { %v1016_v29 = vmul.f32 0.015625, %v1014_v28  ;;  %v1011_v30 = vpop.xlane.xlu0 %1010 }
 0x914   : > { %v1015_v31 = vmul.f32 0.015625, %v1011_v30 }
 0x915   : > { %v1018_v32 = vsub.f32 %v1006_v23, %v1016_v29 }
 0x916   : > { %v1017_v33 = vsub.f32 %v1001_v25, %v1015_v31 }
 0x917   : > { %v1020_v36 = vmul.f32 %v1018_v32, %v1018_v32 }
 0x918   : > { %v1019_v34 = vmul.f32 %v1017_v33, %v1017_v33 }
 0x919   : > { %v1024_v37 = vsel %vm397_vm0, %v1020_v36, 0.0 }
 0x91a   : > { %v1021_v35 = vsel %vm397_vm0, %v1019_v34, 0.0 }
 0x91b   : > { %1022 = vadd.xlane.f32.xlu0 %v1021_v35 }
 0x91f   : > { %1025 = vadd.xlane.f32.xlu0 %v1024_v37 }
 0x9a8   : > { %v1023_v50 = vpop.xlane.xlu0 %1022 }
 0x9a9   : > { %v1027_v51 = vmul.f32 0.015625, %v1023_v50 }
 0x9ab   : > { %v1029_v52 = vadd.f32 1e-05, %v1027_v51 }
 0x9ac   : > { %v1026_v53 = vpop.xlane.xlu0 %1025 }
 0x9ad   : > { %1551 = vrsqrt.f32 %v1029_v52  ;;  %v1028_v54 = vmul.f32 0.015625, %v1026_v53 }
 0x9af   : > { %v1030_v55 = vadd.f32 1e-05, %v1028_v54 }
 0x9b1   : > { %1553 = vrsqrt.f32 %v1030_v55 }
 0x9b7   : > { %v1552_v56 = vpop.eup %1551 }
 0x9b8   : > { %v1033_v58 = vmul.f32 %v1552_v56, %v1017_v33 }
 0x9ba   : > { %v1043_v60 = vmul.f32 %v1302_v57, %v1033_v58 }
 0x9bb   : > { %v1554_v61 = vpop.eup %1553 }
 0x9bc   : > { %v1034_v62 = vmul.f32 %v1554_v61, %v1018_v32  ;;  %v1053_v63 = vadd.f32 %v1304_v59, %v1043_v60 }
 0x9be   : > { %v1044_v0 = vmul.f32 %v1302_v57, %v1034_v62  ;;  %v1055_v1 = vadd.f32 %v1053_v63, %v2057_v16 }
 0x9c0   : > { %v1054_v2 = vadd.f32 %v1304_v59, %v1044_v0  ;;  %1414 = vmatprep.mubr.msk.f32.mxu0 %vm397_vm0, %v1055_v1 }
 0x9c2   : > { %v1056_v3 = vadd.f32 %v1054_v2, %v2059_v17 }
 0x9c4   : > { %1415 = vmatmul.mubr.msk.f32.vlgmr.msra.gmra.mrb[2].mxu0 %vm397_vm0, %v1056_v3 }
 0xa97   : > { %v1416_v5 = vpop.f32.mrb[2].mxu0 }
 0xa98   : > { %v1150_v6 = vadd.f32 %v1416_v5, %v1305_v4  ;;  %v1144_v7 = vpop.f32.mrb[3].mxu0 }
 0xa99   : > { %v1145_v8 = vadd.f32 %v1305_v4, %v1144_v7 }
 0xa9a   : > { %1154 = vst.msk [vmem:[%s379_s21 + $0x8] sm:$0xff] %vm397_vm0, %v1150_v6 }
 0xa9b   : > { %1153 = vst.msk [vmem:[%s379_s21] sm:$0xff] %vm397_vm0, %v1145_v8 }
 0xa9c   : > { %1654 = shalt.err (!%p1651_p1)
}
 0xa9d   : > { %s1655_s21 = scalar_lea.hbm %s2089_s25, 256  ;;  %s1659_s17 = scalar_lea.hbm %s2144_s9, 512 }
 0xa9e   : > { %p1656_p13 = scmp.ne.s32.totalorder %s2089_s25, %s1655_s21  ;;  %p1660_p4 = scmp.lt.u32.totalorder %s2089_s25, %s2144_s9 }
 0xa9f   : > { %p1661_p5 = scmp.lt.u32.totalorder %s1659_s17, %s1655_s21  ;;  %p1663_p11 = scmp.lt.u32.totalorder %s1655_s21, %s2089_s25 }
 0xaa0   : > { %p1657_p6 = pnand %p1656_p13, %p2164_p0 }
 0xaa1   : > { %p1662_p8 = por %p1661_p5, %p1660_p4 }
 0xaa2   : > { %p1658_p10 = pneg %p1657_p6 }
 0xaa3   : > { %p1664_p2 = por %p1663_p11, %p1662_p8 }
 0xaa5   : > { %p1665_p3 = pnand %p1664_p2, %p1658_p10 }
 0xaa7   : > { %1668 = shalt.err (!%p1665_p3)
}
 0xaa8   : > { %s1720_s13 = smov 128   ;;  %s1721_s22 = smov 8  }
 0xaa9   : > { %1475 = dma.vmem_to_hbm [thread:$0]  (%p2164_p0), %s2084_s14, 256, %s2089_s25, %s1156_s28, %s1720_s13, %s1720_s13, %s1721_s22  }
 0xaaa PF: > { %s2165_s19 = sld [smem:[#allocation12_spill]]  ;;  %s1184_s15 = sand.u32 1, %s1699_s30  }
 0xaab   : > { %p2167_p9 = scmp.ge.s32.totalorder %s1711_s12, 2  ;;  %s1185_s21 = scalar_lea.sflag [#allocation4], %s1184_s15 }
 0xab0   : > { %p2166_p7 = scmp.ne.s32.totalorder %s2165_s19, 0 }
 0xab2   : > { %p1489_p12 = pnand %p2167_p9, %p2166_p7 }
 0xab4   : > { %1694 = dma.done.wait (!%p1489_p12), %s1185_s21, 256  }
 0xab5   : > { %1696 = vsyncadd (!%p1489_p12), %s1185_s21, 4294967040  ;;  %p23_p1 = scmp.ge.s32.totalorder %s1888_s20, 4   ;;  %s2168_s30 = smov %s1703_s10 }
 0xab6   : > { %s2169_s10 = smov %s1707_s11  ;;  %s2170_s11 = smov %s1904_s27 }
 0xab7   : > { %s2171_s12 = smov %s1888_s20  ;;  %25 = sbr.rel (!%p23_p1) target bundleno = 6 (0x6), region = 121 }
 0xabe   :  { %1190 = vsyncpa [#allocation3], 1 }
 0xabf   :  { %1192 = vsyncpa [#allocation3 + $0x1], 1 }
 0xac0   :  { %1193 = vsyncpa [#allocation6], 1 }
 0xac1   :  { %1194 = vsyncpa [#allocation4], 1 }
 0xac2   :  { %1196 = vsyncpa [#allocation4 + $0x1], 1 }

</bundles_post_ra>
